<compile_context>
chip_gen: v7x
topology: tpu7x:2x2x1
jax: 0.10.0
libtpu: 0.0.40
codegen_flags: <defaults>
</compile_context>

<pallas_src>
import jax
import jax.numpy as jnp
from jax.experimental import pallas as pl
from jax.experimental.pallas import tpu as pltpu

IN_F = 2      # linear1 in_features
HID_F = 4     # linear1 out_features == tied weight rows
OUT_F = 2     # linear2 out_features


def _tied_mlp_kernel(p_ref, x_ref, o_ref):
    """p_ref: SMEM f32[6] = [m00, m01, m10, m11, c0, c1]
       x_ref: VMEM (2, TB) feature-major input tile (lane axis = batch)
       o_ref: VMEM (2, TB) feature-major output tile

       out_fm[j, :] = M[0, j] * x_fm[0, :] + M[1, j] * x_fm[1, :] + c[j]
    """
    x0 = x_ref[0:1, :]                       # (1, TB)
    x1 = x_ref[1:2, :]                       # (1, TB)
    # Pure VPU broadcast FMAs; no MXU, no XLU.
    o_ref[0:1, :] = x0 * p_ref[0] + x1 * p_ref[2] + p_ref[4]
    o_ref[1:2, :] = x0 * p_ref[1] + x1 * p_ref[3] + p_ref[5]


def model_with_tied_weights(x, w, b, *, tb=2048):
    """x: (B, 2) f32, w: (4, 2) f32, b: (4,) f32 -> (B, 2) f32."""
    B = x.shape[0]

    # Fold the tied layers once, outside the kernel:
    #   out = (x W^T + b) W + b[:2] = x (W^T W) + (b W + b[:2])
    m = jnp.dot(w.T, w)                                   # (2, 2)
    c = jnp.dot(b, w) + b[:OUT_F]                         # (2,)
    params = jnp.concatenate([m.reshape(-1), c]).astype(jnp.float32)  # (6,)

    # Lane-dense, feature-major view: batch maps to the 128-wide lane axis.
    x_fm = x.T                                            # (2, B)

    # Batch tiling: lane-dim block must be a multiple of 128 or the full extent.
    if B > tb and B % 128 == 0:
        TB = tb                                           # tb is a multiple of 128
    else:
        TB = B                                            # whole-array block (always legal)
    grid = pl.cdiv(B, TB)

    out_fm = pl.pallas_call(
        _tied_mlp_kernel,
        out_shape=jax.ShapeDtypeStruct((OUT_F, B), jnp.float32),
        grid=(grid,),
        in_specs=[
            pl.BlockSpec(memory_space=pltpu.MemorySpace.SMEM),   # params (6,) scalars
            pl.BlockSpec((IN_F, TB), lambda i: (0, i)),          # x feature-major tile
        ],
        out_specs=pl.BlockSpec((OUT_F, TB), lambda i: (0, i)),
        compiler_params=pltpu.CompilerParams(
            dimension_semantics=("parallel",)),                  # shard batch on v7x's 2 TCs
    )(params, x_fm)

    return out_fm.T                                       # back to (B, 2)


def init_params(key):
    """Deterministic PyTorch-style init: U(-1/sqrt(fan_in), 1/sqrt(fan_in))."""
    kw, kb = jax.random.split(key)
    bound = 1.0 / (IN_F ** 0.5)
    w = jax.random.uniform(kw, (HID_F, IN_F), jnp.float32, -bound, bound)
    b = jax.random.uniform(kb, (HID_F,), jnp.float32, -bound, bound)
    return w, b


def _reference(x, w, b):
    h = x @ w.T + b
    return h @ w + b[:OUT_F]


if __name__ == "__main__":
    key = jax.random.PRNGKey(0)
    k_param, k_x = jax.random.split(key)

    w, b = init_params(k_param)

    # Small-shape check (single whole-array block).
    x = jax.random.normal(k_x, (8, IN_F), jnp.float32)    # batch=8, features=2
    out = jax.block_until_ready(model_with_tied_weights(x, w, b))
    out_ref = _reference(x, w, b)
    assert out.shape == (8, OUT_F)
    assert jnp.allclose(out, out_ref, atol=1e-5, rtol=1e-5)

    # Larger batch: exercises the lane-dense tiled grid path (TB=2048, grid=4).
    xb = jax.random.normal(jax.random.PRNGKey(1), (8192, IN_F), jnp.float32)
    outb = jax.block_until_ready(model_with_tied_weights(xb, w, b, tb=2048))
    refb = _reference(xb, w, b)
    assert outb.shape == (8192, OUT_F)
    assert jnp.allclose(outb, refb, atol=1e-4, rtol=1e-4)

    print("KERNEL_OK")
</pallas_src>

<mosaic_0001>
module attributes {stable_mosaic.version = 11 : i64} {
  func.func @_tied_mlp_kernel(%arg0: i32, %arg1: memref<6xf32, #tpu.memory_space<smem>>, %arg2: memref<2x8xf32, #tpu.memory_space<vmem>>, %arg3: memref<2x8xf32, #tpu.memory_space<vmem>>) attributes {dimension_semantics = [#tpu.dimension_semantics<parallel>], iteration_bounds = array<i64: 1>, scalar_prefetch = 0 : i64, scratch_operands = 0 : i64, tpu.core_type = #tpu.core_type<tc>, window_params = [{transform_indices = @transform_0, window_bounds = array<i64: 6>}, {transform_indices = @transform_1, window_bounds = array<i64: 2, 8>}, {transform_indices = @transform_2, window_bounds = array<i64: 2, 8>}]} {
    %c0 = arith.constant 0 : index
    %c0_0 = arith.constant 0 : index
    %0 = vector.load %arg2[%c0, %c0_0] : memref<2x8xf32, #tpu.memory_space<vmem>>, vector<1x8xf32>
    %c1 = arith.constant 1 : index
    %c0_1 = arith.constant 0 : index
    %1 = vector.load %arg2[%c1, %c0_1] : memref<2x8xf32, #tpu.memory_space<vmem>>, vector<1x8xf32>
    %c0_2 = arith.constant 0 : index
    %2 = memref.load %arg1[%c0_2] : memref<6xf32, #tpu.memory_space<smem>>
    %3 = vector.broadcast %2 : f32 to vector<1x8xf32>
    %4 = arith.mulf %0, %3 : vector<1x8xf32>
    %c2 = arith.constant 2 : index
    %5 = memref.load %arg1[%c2] : memref<6xf32, #tpu.memory_space<smem>>
    %6 = vector.broadcast %5 : f32 to vector<1x8xf32>
    %7 = arith.mulf %1, %6 : vector<1x8xf32>
    %8 = arith.addf %4, %7 : vector<1x8xf32>
    %c4 = arith.constant 4 : index
    %9 = memref.load %arg1[%c4] : memref<6xf32, #tpu.memory_space<smem>>
    %10 = vector.broadcast %9 : f32 to vector<1x8xf32>
    %11 = arith.addf %8, %10 : vector<1x8xf32>
    %c0_3 = arith.constant 0 : index
    %c0_4 = arith.constant 0 : index
    %12 = vector.load %arg3[%c0_3, %c0_4] : memref<2x8xf32, #tpu.memory_space<vmem>>, vector<1x8xf32>
    tpu.vector_store %arg3[%c0_3, %c0_4], %11 {strides = array<i32>} : memref<2x8xf32, #tpu.memory_space<vmem>>, vector<1x8xf32>,
    %c1_5 = arith.constant 1 : index
    %13 = memref.load %arg1[%c1_5] : memref<6xf32, #tpu.memory_space<smem>>
    %14 = vector.broadcast %13 : f32 to vector<1x8xf32>
    %15 = arith.mulf %0, %14 : vector<1x8xf32>
    %c3 = arith.constant 3 : index
    %16 = memref.load %arg1[%c3] : memref<6xf32, #tpu.memory_space<smem>>
    %17 = vector.broadcast %16 : f32 to vector<1x8xf32>
    %18 = arith.mulf %1, %17 : vector<1x8xf32>
    %19 = arith.addf %15, %18 : vector<1x8xf32>
    %c5 = arith.constant 5 : index
    %20 = memref.load %arg1[%c5] : memref<6xf32, #tpu.memory_space<smem>>
    %21 = vector.broadcast %20 : f32 to vector<1x8xf32>
    %22 = arith.addf %19, %21 : vector<1x8xf32>
    %c1_6 = arith.constant 1 : index
    %c0_7 = arith.constant 0 : index
    %23 = vector.load %arg3[%c1_6, %c0_7] : memref<2x8xf32, #tpu.memory_space<vmem>>, vector<1x8xf32>
    tpu.vector_store %arg3[%c1_6, %c0_7], %22 {strides = array<i32>} : memref<2x8xf32, #tpu.memory_space<vmem>>, vector<1x8xf32>,
    return
  }
  func.func @transform_0(%arg0: i32) -> i32 {
    %c0_i32 = arith.constant 0 : i32
    %c0_i32_0 = arith.constant 0 : i32
    return %c0_i32 : i32
  }
  func.func @transform_1(%arg0: i32) -> (i32, i32) {
    %c0_i32 = arith.constant 0 : i32
    %c0_i32_0 = arith.constant 0 : i32
    return %c0_i32, %arg0 : i32, i32
  }
  func.func @transform_2(%arg0: i32) -> (i32, i32) {
    %c0_i32 = arith.constant 0 : i32
    %c0_i32_0 = arith.constant 0 : i32
    return %c0_i32, %arg0 : i32, i32
  }
}

</mosaic_0001>

<bundles_post_ra>
// kernel: tpu_custom_call.1
= control target key start
LH: loop header
LB: loop body
LE: loop exit
PB: predicated region body
PF: predicated region fallthrough
CT: control target
= control target key end

     0   :  { %7 = vsyncpa [#allocation4], 0  ;;  %s153_s0 = inlined_call_operand.hbm [shape: f32[6], index: 0, kind: input, shape index: {}]   ;;  %s154_s1 = inlined_call_operand.vmem [shape: f32[2,8], index: 1, kind: input, shape index: {}]   ;;  %s155_s2 = inlined_call_operand.hbm [shape: f32[2,8], index: 2, kind: output, shape index: {}]  }
   0x1   :  { %8 = vsyncpa [#allocation3], 0  ;;  %s70_s11 = scalar_lea.hbm %s153_s0, 16 }
   0x2   :  { %p71_p0 = scmp.ne.s32.totalorder %s153_s0, %s70_s11  ;;  %p74_p1 = scmp.lt.u32.totalorder %s70_s11, %s153_s0 }
   0x4   :  { %p76_p2 = pnand %p74_p1, %p71_p0 }
   0x6   :  { %79 = shalt.err (!%p76_p2)
}
   0x7   :  { %s106_s16 = smov [#allocation2]  }
   0x8   :  { %16 = dma.hbm_to_smem %s153_s0, 16, %s106_s16, [#allocation4]  }
   0x9   :  { %102 = dma.done.wait [#allocation4], 16  }
   0xa   :  { %103 = vsyncadd [#allocation4], 4294967280 }
   0xb   :  { %22 = sfence }
   0xc   :  { %s25_s19 = sld [smem:[#allocation2]]  ;;  %s63_s20 = sld [smem:[#allocation2 + $0x2]]  ;;  %v23_v0 = vld [vmem:[%s154_s1] sm:$0x1]  ;;  %v24_v1 = vld [vmem:[%s154_s1 + $0x1] sm:$0x1] }
   0xd   :  { %s64_s21 = sld [smem:[#allocation2 + $0x4]]  ;;  %s65_s22 = sld [smem:[#allocation2 + $0x1]]  ;;  %vm35_vm0 = vcmask 57344  }
   0xe   :  { %s66_s23 = sld [smem:[#allocation2 + $0x3]]  ;;  %s67_s24 = sld [smem:[#allocation2 + $0x5]] }
   0xf   :  { %s107_s0 = smov [#allocation5]  }
  0x10   :  { %s54_s29 = sshll.u32 %s107_s0, 4  ;;  %s55_s29 = int_to_ptr.vmem [resolvable:$true] %s54_s29 }
  0x11   :  { %s80_s1 = scalar_lea.vmem %s55_s29, 32  ;;  %p85_p4 = scmp.lt.s32.totalorder %s55_s29, %s55_s29 }
  0x12   :  { %v26_v2 = vstv %s25_s19  ;;  %v29_v4 = vstv %s63_s20  ;;  %p81_p3 = scmp.ne.s32.totalorder %s55_s29, %s80_s1  ;;  %p86_p5 = scmp.lt.s32.totalorder %s80_s1, %s80_s1 }
  0x13   :  { %v27_v3 = vmul.f32 %v26_v2, %v23_v0  ;;  %v30_v5 = vmul.f32 %v29_v4, %v24_v1  ;;  %v38_v6 = vstv %s65_s22  ;;  %v33_v8 = vstv %s64_s21 }
  0x14   :  { %v41_v7 = vstv %s66_s23  ;;  %v39_v9 = vmul.f32 %v38_v6, %v23_v0  ;;  %v45_v12 = vstv %s67_s24  ;;  %p87_p6 = por %p86_p5, %p85_p4 }
  0x15   :  { %v42_v10 = vmul.f32 %v41_v7, %v24_v1  ;;  %v31_v11 = vadd.f32 %v30_v5, %v27_v3 }
  0x16   :  { %p88_p7 = pnand %p87_p6, %p81_p3 }
  0x17   :  { %v43_v13 = vadd.f32 %v42_v10, %v39_v9  ;;  %v34_v14 = vadd.f32 %v33_v8, %v31_v11 }
  0x19   :  { %v46_v15 = vadd.f32 %v45_v12, %v43_v13  ;;  %36 = vst.msk [vmem:[#allocation5] sm:$0x1] %vm35_vm0, %v34_v14 }
  0x1b   :  { %47 = vst.msk [vmem:[#allocation5 + $0x1] sm:$0x1] %vm35_vm0, %v46_v15 }
  0x1c   :  { %91 = shalt.err (!%p88_p7)
}
  0x1d   :  { %s92_s4 = scalar_lea.hbm %s155_s2, 32 }
  0x1e   :  { %p93_p8 = scmp.ne.s32.totalorder %s155_s2, %s92_s4  ;;  %p96_p9 = scmp.lt.u32.totalorder %s92_s4, %s155_s2 }
  0x20   :  { %p98_p10 = pnand %p96_p9, %p93_p8 }
  0x22   :  { %101 = shalt.err (!%p98_p10)
}
  0x23   :  { %57 = dma.vmem_to_hbm [thread:$0]  %s55_s29, 32, %s155_s2, [#allocation3]  }
  0x24   :  { %104 = dma.done.wait [#allocation3], 32  }
  0x25   :  { %105 = vsyncadd [#allocation3], 4294967264 }
  0x26   :  { %61 = vsyncpa [#allocation3], 1 }
  0x27   :  { %62 = vsyncpa [#allocation4], 1 }

</bundles_post_ra>
